<compile_context>
chip_gen: v7x
topology: tpu7x:2x2x1
jax: 0.10.0
libtpu: 0.0.40
codegen_flags: <defaults>
</compile_context>

<pallas_src>
import jax
import jax.numpy as jnp
from jax.experimental import pallas as pl
from jax.experimental.pallas import tpu as pltpu


def _embed_kernel(xp_ref, w_ref, pos_ref, o_ref):
    # xp_ref : (TN, K)  bf16 patch tile (K = C*ph*pw)
    # w_ref  : (K, H)   bf16 conv weight reshaped for matmul (grid-invariant)
    # pos_ref: (TN, H)  f32 position embeddings with conv bias pre-folded
    #                   (resident across the inner batch axis)
    # o_ref  : (TN, H)
    acc = jnp.dot(xp_ref[...], w_ref[...], preferred_element_type=jnp.float32)
    o_ref[...] = (acc + pos_ref[...]).astype(o_ref.dtype)


def _round_up(a, m):
    return -(-a // m) * m


def _choose_tiling(n, max_tn=512):
    """Pick (tile_n, padded_n) for the patch axis.

    Preferences:
      * tile_n a multiple of 16 (full bf16 sublane packing), capped at 256
        (one MXU-sized M block) and at max_tn,
      * at least 2 tiles along the patch axis whenever n > 8, so the
        "parallel" patch axis keeps both v7x TensorCores busy even at B=1,
      * exact divisors of n when one exists (no padding); otherwise pad n up
        (e.g. stock ViT n=196 -> tile 112, padded 224) - the wrapper slices
        the padded rows off the output.
    """
    cap = max(8, min(256, max_tn))
    best = None
    for tn in range(16, cap + 1, 16):
        if n % tn == 0 and n // tn >= 2:
            best = tn
    if best is not None:
        return best, n
    if n <= 8:
        return max(n, 1), n
    half = -(-n // 2)
    align = 16 if half >= 16 else 8
    tn = min(_round_up(half, align), cap)
    return tn, _round_up(n, tn)


def embeddings_forward(x, conv_w, conv_b, pos_emb, patch_size,
                       *, tile_n=None, max_tile_n=512,
                       compute_dtype=jnp.bfloat16, out_dtype=None):
    """ViT Embeddings forward (non-hybrid path).

    x: [B, C, H, W] (NCHW, PyTorch convention).
    conv_w: [hidden, C, ph, pw], conv_b: [hidden], pos_emb: [1, N, hidden]
    (patches only - this module has no CLS row).
    Returns (embeddings [B, N, hidden], features=None).

    Note: bf16 operands / bf16 output with f32 accumulation is a deliberate
    precision tradeoff vs. the f32 PyTorch Conv2d; pass out_dtype=jnp.float32
    (and compute_dtype=jnp.float32) for a bit-closer match.
    """
    B, C, H, W = x.shape
    ph, pw = patch_size
    assert H % ph == 0 and W % pw == 0, "image size must be divisible by patch size"
    Hp, Wp = H // ph, W // pw
    N = Hp * Wp
    hidden = conv_w.shape[0]
    K = C * ph * pw
    assert conv_w.shape == (hidden, C, ph, pw)
    assert pos_emb.shape == (1, N, hidden), (
        "position table must be patches-only (no CLS row) for this module")
    out_dtype = compute_dtype if out_dtype is None else out_dtype

    if tile_n is None:
        tn, Np = _choose_tiling(N, max_tile_n)
    else:
        tn = tile_n
        assert tn % 8 == 0 or tn == N
        Np = _round_up(N, tn)
    n_tiles = Np // tn

    # --- im2col patch extraction (flatten order (c, ph, pw) matches the conv
    # weight flatten).  Cast to bf16 first so the materialized copy is
    # half-width.  No allow_input_fusion: the copy is materialized once in
    # HBM so the kernel DMA reads fully contiguous K-length rows rather than
    # pw-element (~32 B) strided runs from a fused transpose.
    xc = x.astype(compute_dtype)
    xp = xc.reshape(B, C, Hp, ph, Wp, pw)
    xp = jnp.transpose(xp, (0, 2, 4, 1, 3, 5))          # (B, Hp, Wp, C, ph, pw)
    xp = xp.reshape(B, N, K)

    w2d = conv_w.reshape(hidden, K).T.astype(compute_dtype)        # (K, hidden)
    # Fold the conv bias into the position embeddings: one less input / VALU add.
    pos2d = (pos_emb.reshape(N, hidden).astype(jnp.float32)
             + conv_b.reshape(1, hidden).astype(jnp.float32))       # (N, hidden)

    if Np != N:
        # Zero-padded rows produce zero outputs and are sliced off below.
        xp = jnp.pad(xp, ((0, 0), (0, Np - N), (0, 0)))
        pos2d = jnp.pad(pos2d, ((0, Np - N), (0, 0)))

    out_itemsize = jnp.dtype(out_dtype).itemsize
    cost = pl.CostEstimate(
        flops=2 * B * Np * K * hidden,
        transcendentals=0,
        # pos is fetched once (resident across the inner batch axis), weight once.
        bytes_accessed=(B * Np * K * 2 + K * hidden * 2
                        + Np * hidden * 4 + B * Np * hidden * out_itemsize),
    )

    # Pipelined-buffer footprint: double-buffered xp / pos / out tiles plus the
    # grid-invariant weight (default double buffer).  Cap at 48 MiB so v7x's
    # 64 MiB physical VMEM keeps headroom; floor at 32 MiB (above v5e's 16 MiB
    # default scoped limit) so larger explicit tile_n still fits.
    buf_bytes = (2 * tn * K * 2
                 + 2 * K * hidden * 2
                 + 2 * tn * hidden * 4
                 + 2 * tn * hidden * out_itemsize)
    vmem_limit = min(48 * 1024 * 1024,
                     max(32 * 1024 * 1024, int(buf_bytes * 3) // 2))

    out = pl.pallas_call(
        _embed_kernel,
        out_shape=jax.ShapeDtypeStruct((B, Np, hidden), out_dtype),
        # Batch innermost: the pos2d block index is unchanged across
        # consecutive steps, so it stays resident instead of being re-DMA'd
        # for every batch element.
        grid=(n_tiles, B),
        in_specs=[
            # Patch tile: leading size-1 batch dim squeezed out of the kernel ref.
            pl.BlockSpec((None, tn, K), lambda n, b: (b, n, 0)),
            # Weight: constant index_map -> resident across the whole grid.
            pl.BlockSpec((K, hidden), lambda n, b: (0, 0)),
            # Position embeddings (+ folded bias): varies with the N tile only,
            # i.e. constant along the inner batch axis.
            pl.BlockSpec((tn, hidden), lambda n, b: (n, 0)),
        ],
        out_specs=pl.BlockSpec((None, tn, hidden), lambda n, b: (b, n, 0)),
        compiler_params=pltpu.CompilerParams(
            # Both grid axes are independent -> megacore sharding on v7x
            # (2 TCs); the tiling guarantees n_tiles >= 2 for N > 8, so both
            # cores get work even at batch 1.  Harmless on v5e/v6e (1 TC).
            dimension_semantics=("parallel", "parallel"),
            vmem_limit_bytes=vmem_limit,
        ),
        cost_estimate=cost,
    )(xp, w2d, pos2d)

    if Np != N:
        out = out[:, :N, :]

    # TODO(synk): dropout is identity at inference; training-mode dropout
    # (config.transformer['dropout_rate']) would need pltpu.prng_seed /
    # pltpu.prng_random_bits inside the kernel.
    features = None
    return out, features


if __name__ == "__main__":
    # Small, module-consistent shapes (non-hybrid path):
    # img_size=28, patch size=4 -> 7x7 = 49 patches (mirrors the stock ViT
    # 14x14=196 case: no clean divisor, so the padded-N path is exercised:
    # tile_n=32, padded N=64, grid=(2, 2)).  in_channels=4; hidden_size=128
    # keeps the output lane-dense like real ViT hidden sizes (768/1024).
    B, C, IMG, P, HID = 2, 4, 28, 4, 128
    N = (IMG // P) * (IMG // P)     # 49

    key = jax.random.PRNGKey(0)
    kx, kw, kb, kp = jax.random.split(key, 4)
    x = jax.random.normal(kx, (B, C, IMG, IMG), dtype=jnp.float32)
    conv_w = jax.random.normal(kw, (HID, C, P, P), dtype=jnp.float32) * 0.02
    conv_b = jax.random.normal(kb, (HID,), dtype=jnp.float32) * 0.02
    pos_emb = jax.random.normal(kp, (1, N, HID), dtype=jnp.float32) * 0.02

    emb, feats = embeddings_forward(x, conv_w, conv_b, pos_emb, (P, P))
    emb = jax.block_until_ready(emb)

    # Reference: strided conv (NCHW) -> flatten(2).transpose(-1,-2) -> + pos_emb,
    # using the same bf16 operands / f32 accumulation as the kernel, then cast
    # to the kernel's bf16 output dtype.
    ref = jax.lax.conv_general_dilated(
        x.astype(jnp.bfloat16), conv_w.astype(jnp.bfloat16),
        window_strides=(P, P), padding="VALID",
        dimension_numbers=("NCHW", "OIHW", "NCHW"),
        preferred_element_type=jnp.float32,
    ) + conv_b.reshape(1, HID, 1, 1)
    ref = (ref.reshape(B, HID, N).transpose(0, 2, 1) + pos_emb).astype(jnp.bfloat16)

    assert emb.shape == (B, N, HID)
    assert emb.dtype == jnp.bfloat16
    assert feats is None
    assert jnp.allclose(emb.astype(jnp.float32), ref.astype(jnp.float32),
                        atol=2e-2, rtol=2e-2)
    print("KERNEL_OK")
</pallas_src>

<mosaic_0001>
module attributes {stable_mosaic.version = 11 : i64} {
  func.func @_embed_kernel(%arg0: i32, %arg1: i32, %arg2: memref<1x32x64xbf16, #tpu.memory_space<vmem>>, %arg3: memref<64x128xbf16, #tpu.memory_space<vmem>>, %arg4: memref<32x128xf32, #tpu.memory_space<vmem>>, %arg5: memref<1x32x128xbf16, #tpu.memory_space<vmem>>) attributes {dimension_semantics = [#tpu.dimension_semantics<parallel>, #tpu.dimension_semantics<parallel>], iteration_bounds = array<i64: 2, 2>, scalar_prefetch = 0 : i64, scratch_operands = 0 : i64, tpu.core_type = #tpu.core_type<tc>, window_params = [{transform_indices = @transform_0, window_bounds = array<i64: 1, 32, 64>}, {pipeline_mode = #tpu.pipeline_mode<synchronous>, transform_indices = @transform_1, window_bounds = array<i64: 64, 128>}, {transform_indices = @transform_2, window_bounds = array<i64: 32, 128>}, {transform_indices = @transform_3, window_bounds = array<i64: 1, 32, 128>}]} {
    %c0 = arith.constant 0 : index
    %c0_0 = arith.constant 0 : index
    %c0_1 = arith.constant 0 : index
    %0 = vector.load %arg2[%c0, %c0_0, %c0_1] : memref<1x32x64xbf16, #tpu.memory_space<vmem>>, vector<1x32x64xbf16>
    %1 = vector.shape_cast %0 : vector<1x32x64xbf16> to vector<32x64xbf16>
    %c0_2 = arith.constant 0 : index
    %c0_3 = arith.constant 0 : index
    %2 = vector.load %arg3[%c0_2, %c0_3] : memref<64x128xbf16, #tpu.memory_space<vmem>>, vector<64x128xbf16>
    %cst = arith.constant dense<0.000000e+00> : vector<32x128xf32>
    %3 = tpu.matmul %1, %2, %cst {dimension_numbers = #tpu.dot_dimension_numbers<[1], [0], [0], [1], [0, 0, 1, 1], [], []>} : vector<32x64xbf16>, vector<64x128xbf16>, vector<32x128xf32> -> vector<32x128xf32>
    %c0_4 = arith.constant 0 : index
    %c0_5 = arith.constant 0 : index
    %4 = vector.load %arg4[%c0_4, %c0_5] : memref<32x128xf32, #tpu.memory_space<vmem>>, vector<32x128xf32>
    %5 = arith.addf %3, %4 : vector<32x128xf32>
    %6 = arith.truncf %5 : vector<32x128xf32> to vector<32x128xbf16>
    %c0_6 = arith.constant 0 : index
    %c0_7 = arith.constant 0 : index
    %c0_8 = arith.constant 0 : index
    %7 = vector.load %arg5[%c0_6, %c0_7, %c0_8] : memref<1x32x128xbf16, #tpu.memory_space<vmem>>, vector<1x32x128xbf16>
    %8 = vector.shape_cast %7 : vector<1x32x128xbf16> to vector<32x128xbf16>
    %9 = vector.shape_cast %6 : vector<32x128xbf16> to vector<1x32x128xbf16>
    tpu.vector_store %arg5[%c0_6, %c0_7, %c0_8], %9 {strides = array<i32>} : memref<1x32x128xbf16, #tpu.memory_space<vmem>>, vector<1x32x128xbf16>,
    return
  }
  func.func @transform_0(%arg0: i32, %arg1: i32) -> (i32, i32, i32) {
    %c0_i32 = arith.constant 0 : i32
    %c0_i32_0 = arith.constant 0 : i32
    return %arg1, %arg0, %c0_i32 : i32, i32, i32
  }
  func.func @transform_1(%arg0: i32, %arg1: i32) -> (i32, i32) {
    %c0_i32 = arith.constant 0 : i32
    %c0_i32_0 = arith.constant 0 : i32
    %c0_i32_1 = arith.constant 0 : i32
    return %c0_i32, %c0_i32_0 : i32, i32
  }
  func.func @transform_2(%arg0: i32, %arg1: i32) -> (i32, i32) {
    %c0_i32 = arith.constant 0 : i32
    %c0_i32_0 = arith.constant 0 : i32
    return %arg0, %c0_i32 : i32, i32
  }
  func.func @transform_3(%arg0: i32, %arg1: i32) -> (i32, i32, i32) {
    %c0_i32 = arith.constant 0 : i32
    %c0_i32_0 = arith.constant 0 : i32
    return %arg1, %arg0, %c0_i32 : i32, i32, i32
  }
}

</mosaic_0001>

<bundles_post_ra>
// kernel: tpu_custom_call.1
= control target key start
LH: loop header
LB: loop body
LE: loop exit
PB: predicated region body
PF: predicated region fallthrough
CT: control target
= control target key end

     0   :  { %s1335_s0 = inlined_call_operand.hbm [shape: bf16[2,64,64], index: 0, kind: input, shape index: {}]   ;;  %s1336_s1 = inlined_call_operand.hbm [shape: bf16[64,128], index: 1, kind: input, shape index: {}]   ;;  %s1337_s2 = inlined_call_operand.hbm [shape: f32[64,128], index: 2, kind: input, shape index: {}]   ;;  %s1338_s3 = inlined_call_operand.hbm [shape: bf16[2,64,128], index: 3, kind: output, shape index: {}]  }
   0x1   :  { %1353 = sst [smem:[#allocation19_spill]] %s1335_s0 }
   0x2   :  { %1354 = sst [smem:[#allocation20_spill]] %s1338_s3 }
   0x3   :  { %8 = vsyncpa [#allocation3], 0 }
   0x4   :  { %10 = vsyncpa [#allocation3 + $0x1], 0 }
   0x5   :  { %11 = vsyncpa [#allocation6], 0 }
   0x6   :  { %12 = vsyncpa [#allocation4], 0 }
   0x7   :  { %14 = vsyncpa [#allocation4 + $0x1], 0  ;;  %s974_s12 = smov 0   ;;  %s976_s13 = smov 0  }
   0x8   :  { %s978_s14 = smov 0   ;;  %s980_s15 = smov 0  }
   0x9   :  { %s982_s16 = smov 0   ;;  %s984_s17 = smov 0  }
   0xa   :  { %s986_s18 = smov 0   ;;  %s988_s19 = smov 0  }
   0xb   :  { %s990_s20 = smov 0   ;;  %s992_s21 = smov 0  }
   0xc   :  { %s994_s22 = smov 0  }
   0xd LB: > { %1355 = sst [smem:[#allocation13_spill]] %s922_s17  ;;  %s29_s23 = sadd.s32 1, %s934_s20  ;;  %s942_s22 = sphi %s994_s22, %s20_s22   ;;  %s938_s21 = sphi %s992_s21, %s1398_s21   ;;  %s934_s20 = sphi %s990_s20, %s1390_s20   ;;  %s930_s19 = sphi %s988_s19, %s1397_s19   ;;  %s926_s18 = sphi %s986_s18, %s1389_s18   ;;  %s922_s17 = sphi %s984_s17, %s1388_s17   ;;  %s918_s16 = sphi %s982_s16, %s1396_s16   ;;  %s914_s15 = sphi %s980_s15, %s1395_s15   ;;  %s910_s14 = sphi %s978_s14, %s1394_s14   ;;  %s906_s13 = sphi %s976_s13, %s1393_s13   ;;  %s902_s12 = sphi %s974_s12, %s1392_s12  }
   0xe   : > { %1356 = sst [smem:[#allocation14_spill]] %s926_s18  ;;  %s32_s24 = sadd.s32 1, %s938_s21 }
   0xf   : > { %1357 = sst [smem:[#allocation15_spill]] %s934_s20  ;;  %p30_p0 = scmp.ge.s32.totalorder %s29_s23, 2 }
  0x10   : > { %s41_s25 = sadd.s32 1, %s922_s17  ;;  %p48_p1 = scmp.ne.s32.totalorder %s922_s17, %s918_s16 }
  0x11   : > { %p1343_p2 = scmp.eq.s32.totalorder %s942_s22, 0  ;;  %s1400_s23 = smov (%p30_p0, %s29_s23), 0 }
  0x12   : > { %1358 = sst [smem:[#allocation16_spill]] %s1400_s23  ;;  %s1402_s24 = smov (!%p30_p0, %s32_s24), %s938_s21 }
  0x13   : > { %s36_s26 = ssub.s32 %s934_s20, %s1400_s23  ;;  %p1045_p3 = por %p1343_p2, %p48_p1 }
  0x14   : > { %p34_p4 = scmp.ge.s32.totalorder %s1402_s24, 2  ;;  %p1342_p5 = scmp.lt.s32.totalorder %s942_s22, 4 }
  0x15   : > { %s166_s28 = sand.u32 1, %s942_s22   ;;  %s168_s4 = sand.u32 1, %s922_s17  }
  0x16   : > { %s1404_s24 = smov (%p34_p4, %s1402_s24), 0  ;;  %s530_s5 = sshll.u32 %s168_s4, 4 }
  0x17   : > { %1360 = sst [smem:[#allocation17_spill]] %s1404_s24  ;;  %s1055_s29 = ssub.s32 %s938_s21, %s1404_s24 }
  0x18   : > { %s38_s30 = sor.u32 %s1055_s29, %s36_s26  ;;  %s531_s6 = sshll.u32 %s938_s21, 2 }
  0x19   : > { %p39_p7 = scmp.eq.s32.totalorder %s38_s30, 0  ;;  %s532_s8 = sshll.u32 %s934_s20, 3 }
  0x1a   : > { %s176_s9 = sadd.s32 %s532_s8, %s531_s6  ;;  %s170_s10 = scalar_lea.vmem [#allocation2], %s530_s5 }
  0x1b   : > { %s1062_s7 = scalar_select %p39_p7, %s922_s17, %s41_s25  }
  0x1c   : > { %s179_s11 = sshll.u32 %s170_s10, 4  ;;  %s533_s23 = sshll.u32 %s176_s9, 6  ;;  %s1065_s11 = int_to_ptr.vmem [resolvable:$true] %s179_s11 }
  0x1d   : > { %1361 = sst [smem:[#allocation18_spill]] %s1062_s7  ;;  %s1362_s0 = sld [smem:[#allocation19_spill]] }
  0x1e   : > { %p1076_p8 = pnand %p1342_p5, %p1045_p3  ;;  %s1080_s26 = scalar_lea.sflag [#allocation3], %s166_s28 }
  0x20   : > { %p726_p10 = pneg %p1076_p8 }
  0x23   : > { %s1070_s18 = scalar_lea.hbm %s1362_s0, %s533_s23  ;;  %s729_s24 = scalar_lea.hbm %s1362_s0, 1024 }
  0x24   : > { %s724_s30 = scalar_lea.hbm %s1070_s18, 256  ;;  %p730_p13 = scmp.lt.u32.totalorder %s1070_s18, %s1362_s0 }
  0x25   : > { %p725_p9 = scmp.ne.s32.totalorder %s1070_s18, %s724_s30  ;;  %p731_p0 = scmp.lt.u32.totalorder %s729_s24, %s724_s30 }
  0x26   : > { %p733_p4 = scmp.lt.u32.totalorder %s724_s30, %s1070_s18 }
  0x27   : > { %p727_p11 = pnand %p726_p10, %p725_p9  ;;  %p732_p3 = por %p731_p0, %p730_p13 }
  0x29   : > { %p728_p12 = pneg %p727_p11  ;;  %p734_p7 = por %p733_p4, %p732_p3 }
  0x2b   : > { %p735_p5 = pnand %p734_p7, %p728_p12 }
  0x2d   : > { %738 = shalt.err (!%p735_p5)
}
  0x2e   : > { %s739_s28 = scalar_lea.vmem %s1065_s11, 256  ;;  %s944_s5 = smov [#allocation2]  }
  0x2f   : > { %p740_p9 = scmp.ne.s32.totalorder %s1065_s11, %s739_s28  ;;  %s744_s6 = sshll.u32 %s944_s5, 4  ;;  %s745_s6 = int_to_ptr.vmem [resolvable:$false] %s744_s6 }
  0x30   : > { %s746_s8 = scalar_lea.vmem %s745_s6, 512  ;;  %p747_p6 = scmp.lt.s32.totalorder %s1065_s11, %s745_s6 }
  0x31   : > { %p742_p11 = pnand %p740_p9, %p726_p10  ;;  %p748_p13 = scmp.lt.s32.totalorder %s746_s8, %s739_s28 }
  0x33   : > { %p743_p2 = pneg %p742_p11  ;;  %p749_p0 = por %p748_p13, %p747_p6 }
  0x35   : > { %p750_p3 = pnand %p749_p0, %p743_p2 }
  0x37   : > { %753 = shalt.err (!%p750_p3)
}
  0x38   : > { %s1344_s9 = smov 64   ;;  %s1345_s10 = smov 4  }
  0x39   : > { %611 = dma.hbm_to_vmem [thread:$0]  (!%p1076_p8), %s1070_s18, 256, %s1065_s11, %s1080_s26, %s1344_s9, %s1344_s9, %s1345_s10  }
  0x3a   : > { %s1112_s30 = sadd.s32 4294967295, %s942_s22   ;;  %s526_s3 = sadd.s32 4294967294, %s942_s22  }
  0x3b   : > { %p54_p2 = scmp.ne.s32.totalorder %s918_s16, %s914_s15  ;;  %p1346_p5 = scmp.eq.s32.totalorder %s1112_s30, 0 }
  0x3c   : > { %p101_p6 = scmp.ne.s32.totalorder %s906_s13, %s902_s12  ;;  %p127_p10 = scmp.eq.s32.totalorder %s1112_s30, 3 }
  0x3d   : > { %p133_p12 = scmp.eq.s32.totalorder %s526_s3, 3  ;;  %p1123_p8 = por %p1346_p5, %p54_p2 }
  0x3e   : > { %p1129_p4 = por %p101_p6, %p1346_p5  ;;  %p1136_p7 = por %p127_p10, %p48_p1 }
  0x3f   : > { %s1364_s18 = scalar_select %p1123_p8, 1, 0 }
  0x40   : > { %s1365_s11 = scalar_select %p1129_p4, 1, 0 }
  0x41   : > { %s1366_s12 = scalar_select %p1136_p7, 1, 0 }
  0x42   : > { %p1140_p9 = por %p133_p12, %p54_p2  ;;  %p527_p11 = scmp.ge.s32.totalorder %s942_s22, 1 }
  0x43   : > { %p140_p13 = scmp.lt.s32.totalorder %s942_s22, 5  ;;  %s947_s24 = smov [#allocation5]  }
  0x44   : > { %s1367_s25 = scalar_select %p1140_p9, 1, 0 }
  0x45   : > { %p1146_p0 = pnand %p527_p11, %p140_p13  ;;  %s152_s27 = sshll.u32 %s947_s24, 4  ;;  %s153_s27 = int_to_ptr.vmem [resolvable:$true] %s152_s27 }
  0x46   : > { %s88_s4 = sadd.s32 1, %s910_s14  ;;  %p95_p1 = scmp.ne.s32.totalorder %s910_s14, %s906_s13 }
  0x47   : > { %s1368_s23 = scalar_select %p1146_p0, 1, 0 }
  0x48   : > { %p604_p3 = pneg %p1146_p0  ;;  %s191_s5 = sand.u32 1, %s910_s14  }
  0x49   : > { %p1370_p2 = scmp.eq.s32.totalorder %s1055_s29, 0  ;;  %p1371_p10 = scmp.eq.s32.totalorder %s942_s22, 0 }
  0x4a   : > { %p1157_p6 = pnand %p604_p3, %p1346_p5  ;;  %s754_s9 = scalar_lea.hbm %s1336_s1, 512 }
  0x4b   : > { %s1165_s6 = scalar_select %p1370_p2, %s910_s14, %s88_s4  }
  0x4c   : > { %p1169_p12 = por %p95_p1, %p1371_p10  ;;  %p755_p11 = scmp.ne.s32.totalorder %s1336_s1, %s754_s9 }
  0x4d   : > { %p756_p13 = pneg %p1157_p6  ;;  %p761_p2 = scmp.lt.u32.totalorder %s754_s9, %s1336_s1 }
  0x4e   : > { %s1372_s8 = scalar_select %p1169_p12, 1, 0 }
  0x4f   : > { %p757_p3 = pnand %p756_p13, %p755_p11 }
  0x51   : > { %p758_p5 = pneg %p757_p3 }
  0x53   : > { %p763_p1 = pnand %p761_p2, %p758_p5 }
  0x55   : > { %766 = shalt.err (!%p763_p1)
}
  0x56   : > { %s767_s20 = scalar_lea.vmem %s153_s27, 512  ;;  %p775_p4 = scmp.lt.s32.totalorder %s153_s27, %s153_s27 }
  0x57   : > { %p768_p10 = scmp.ne.s32.totalorder %s153_s27, %s767_s20  ;;  %p776_p8 = scmp.lt.s32.totalorder %s767_s20, %s767_s20 }
  0x59   : > { %p770_p9 = pnand %p768_p10, %p756_p13  ;;  %p777_p0 = por %p776_p8, %p775_p4 }
  0x5b   : > { %p771_p7 = pneg %p770_p9 }
  0x5d   : > { %p778_p12 = pnand %p777_p0, %p771_p7 }
  0x5f   : > { %781 = shalt.err (!%p778_p12)
}
  0x60   : > { %s1373_s0 = smov 4   ;;  %s1374_s10 = smov 64  }
  0x61   : > { %607 = dma.hbm_to_vmem [thread:$0]  (!%p1157_p6), %s1336_s1, 512, %s153_s27, [#allocation6], %s1374_s10, %s1374_s10, %s1373_s0  }
  0x62   : > { %s534_s9 = sshll.u32 %s191_s5, 5  ;;  %s560_s29 = sshll.u32 %s938_s21, 9 }
  0x63   : > { %s1196_s20 = scalar_lea.hbm %s1337_s2, %s560_s29  ;;  %s193_s28 = scalar_lea.vmem [#allocation7], %s534_s9 }
  0x64   : > { %s200_s17 = sshll.u32 %s193_s28, 4  ;;  %p1375_p5 = scmp.ne.s32.totalorder %s1372_s8, 0  ;;  %s1206_s17 = int_to_ptr.vmem [resolvable:$true] %s200_s17 }
  0x65   : > { %p1376_p8 = scmp.lt.s32.totalorder %s942_s22, 4  ;;  %s782_s27 = scalar_lea.hbm %s1196_s20, 512 }
  0x66   : > { %p783_p7 = scmp.ne.s32.totalorder %s1196_s20, %s782_s27  ;;  %s787_s8 = scalar_lea.hbm %s1337_s2, 1024 }
  0x67   : > { %p1202_p4 = pnand %p1376_p8, %p1375_p5  ;;  %p788_p12 = scmp.lt.u32.totalorder %s1196_s20, %s1337_s2 }
  0x68   : > { %p789_p11 = scmp.lt.u32.totalorder %s787_s8, %s782_s27  ;;  %p791_p3 = scmp.lt.u32.totalorder %s782_s27, %s1196_s20 }
  0x69   : > { %p784_p9 = pneg %p1202_p4 }
  0x6a   : > { %p790_p13 = por %p789_p11, %p788_p12 }
  0x6b   : > { %p785_p0 = pnand %p784_p9, %p783_p7 }
  0x6c   : > { %p792_p2 = por %p791_p3, %p790_p13 }
  0x6d   : > { %p786_p6 = pneg %p785_p0 }
  0x6f   : > { %p793_p1 = pnand %p792_p2, %p786_p6 }
  0x71   : > { %796 = shalt.err (!%p793_p1)
}
  0x72   : > { %s797_s24 = scalar_lea.vmem %s1206_s17, 512  ;;  %s948_s9 = smov [#allocation7]  }
  0x73   : > { %p798_p10 = scmp.ne.s32.totalorder %s1206_s17, %s797_s24  ;;  %s802_s29 = sshll.u32 %s948_s9, 4  ;;  %s803_s29 = int_to_ptr.vmem [resolvable:$false] %s802_s29 }
  0x74   : > { %s804_s4 = scalar_lea.vmem %s803_s29, 1024  ;;  %p805_p7 = scmp.lt.s32.totalorder %s1206_s17, %s803_s29 }
  0x75   : > { %p800_p5 = pnand %p798_p10, %p784_p9  ;;  %p806_p0 = scmp.lt.s32.totalorder %s804_s4, %s797_s24 }
  0x77   : > { %p801_p8 = pneg %p800_p5  ;;  %p807_p12 = por %p806_p0, %p805_p7 }
  0x79   : > { %p808_p11 = pnand %p807_p12, %p801_p8 }
  0x7b   : > { %811 = shalt.err (!%p808_p11)
}
  0x7c   : > { %s949_s28 = smov 128   ;;  %s950_s27 = smov 8  }
  0x7d   : > { %614 = dma.hbm_to_vmem [thread:$0]  (!%p1202_p4), %s1196_s20, 512, %s1206_s17, %s1080_s26, %s949_s28, %s949_s28, %s950_s27  }
  0x7e   : > { %p1378_p9 = scmp.ne.s32.totalorder %s1368_s23, 0 }
  0x7f   : > { %s214_s7 = sand.u32 (!%p1378_p9), 1, %s1112_s30   ;;  %s216_s5 = sand.u32 (!%p1378_p9), 1, %s918_s16  }
  0x80   : > { %212 = sbr.rel (%p1378_p9) target bundleno = 394 (0x18a), region = 32  ;;  %s1240_s8 = sshll.u32 (!%p1378_p9), %s216_s5, 4 }
  0x81   : > { %s215_s0 = scalar_lea.sflag (!%p1378_p9), [#allocation3], %s214_s7  ;;  %s218_s10 = scalar_lea.vmem (!%p1378_p9), [#allocation2], %s1240_s8 }
  0x82   : > { %p1379_p6 = scmp.ne.s32.totalorder (!%p1378_p9), %s1364_s18, 0 }
  0x87   : > { %885 = dma.done.wait (%p1379_p6), %s215_s0, 256  }
  0x88   : > { %887 = vsyncadd (%p1379_p6), %s215_s0, 4294967040  ;;  %p1380_p4 = scmp.eq.s32.totalorder %s1112_s30, 0 }
  0x8a   : > { %889 = dma.done.wait (%p1380_p4), [#allocation6], 512   ;;  %p1381_p13 = pmov %p1380_p4 }
  0x8b   : > { %s229_s17 = sand.u32 1, %s906_s13   ;;  %p1382_p3 = scmp.ne.s32.totalorder %s1365_s11, 0 }
  0x8c   : > { %891 = vsyncadd (%p1381_p13), [#allocation6], 4294966784  ;;  %s540_s26 = sshll.u32 %s229_s17, 5 }
  0x8d   : > { %s1252_s23 = scalar_lea.vmem [#allocation7], %s540_s26 }
  0x8e   : > { %893 = dma.done.wait (%p1382_p3), %s215_s0, 512  }
  0x8f   : > { %895 = vsyncadd (%p1382_p3), %s215_s0, 4294966784  ;;  %v718_v0 = vld [vmem:[#allocation5] sm:$0xff]   ;;  %v719_v1 = vld [vmem:[#allocation5 + $0x8] sm:$0xff]   ;;  %s1383_s18 = sld [smem:[#allocation14_spill]]  ;;  %vm313_vm0 = vcmask 523264   ;;  %s555_s30 = sshll.u32 %s930_s19, 2 }
  0x90   : > { %582 = vmatprep.subr.bf16.mxu0 %v718_v0  ;;  %v720_v2 = vld [vmem:[#allocation5 + $0x10] sm:$0xff]   ;;  %v721_v4 = vld [vmem:[#allocation5 + $0x18] sm:$0xff]   ;;  %v275_v10 = vld [vmem:[%s1252_s23] sm:$0xff]  ;;  %s258_s3 = scalar_lea.vmem [#allocation8], %s1240_s8  ;;  %s1384_s4 = sld [smem:[#allocation20_spill]] }
  0x91   : > { %583 = vmatpush3.bf16.msra.mxu0 %v718_v0  ;;  %v722_v3 = vld [vmem:[%s218_s10] sm:$0xff]   ;;  %v723_v5 = vld [vmem:[%s218_s10 + $0x8] sm:$0xff]   ;;  %s405_s24 = sshll.u32 %s258_s3, 4  ;;  %s1274_s27 = scalar_lea.sflag [#allocation4], %s216_s5  ;;  %s1265_s24 = int_to_ptr.vmem [resolvable:$true] %s405_s24 }
  0x92   : > { %584 = vmatprep.subr.bf16.mxu0 %v719_v1  ;;  %590 = vmatprep.mubr.msk.bf16.mxu0 %vm313_vm0, %v722_v3  ;;  %v277_v6 = vld [vmem:[%s1252_s23 + $0x10] sm:$0xff]  ;;  %v278_v8 = vld [vmem:[%s1252_s23 + $0x18] sm:$0xff]  ;;  %v276_v11 = vld [vmem:[%s1252_s23 + $0x8] sm:$0xff]  ;;  %s812_s7 = scalar_lea.vmem %s1265_s24, 256  ;;  %p1385_p1 = scmp.ne.s32.totalorder %s1366_s12, 0 }
  0x93   : > { %p813_p2 = scmp.ne.s32.totalorder %s1265_s24, %s812_s7  ;;  %s951_s8 = smov [#allocation8]  }
  0x94   : > { %s816_s0 = sshll.u32 %s951_s8, 4  ;;  %s817_s0 = int_to_ptr.vmem [resolvable:$false] %s816_s0 }
  0x95   : > { %585 = vmatpush3.bf16.msra.mxu0 %v719_v1  ;;  %s556_s11 = sshll.u32 %s1383_s18, 3  ;;  %p814_p10 = pnand %p813_p2, %p1385_p1 }
  0x96   : > { %586 = vmatprep.subr.bf16.mxu0 %v720_v2  ;;  %s402_s20 = sadd.s32 %s556_s11, %s555_s30  ;;  %s818_s10 = scalar_lea.vmem %s817_s0, 512 }
  0x97   : > { %s557_s9 = sshll.u32 %s402_s20, 6  ;;  %p815_p5 = pneg %p814_p10 }
  0x98   : > { %s1270_s28 = scalar_lea.hbm %s1384_s4, %s557_s9  ;;  %p819_p8 = scmp.lt.s32.totalorder %s1265_s24, %s817_s0 }
  0x99   : > { %587 = vmatpush3.bf16.msra.mxu0 %v720_v2  ;;  %p820_p7 = scmp.lt.s32.totalorder %s818_s10, %s812_s7 }
  0x9a   : > { %588 = vmatprep.subr.bf16.mxu0 %v721_v4 }
  0x9b   : > { %p821_p0 = por %p820_p7, %p819_p8 }
  0x9d   : > { %589 = vmatpush3.bf16.msra.mxu0 %v721_v4  ;;  %p822_p12 = pnand %p821_p0, %p815_p5 }
  0xa0   : > { %591 = vmatmul.mubr.msk.bf16.vlgmr.msra.gmra.mrb[0].mxu0 %vm313_vm0, %v723_v5 }
 0x173   : > { %v592_v7 = vpop.f32.mrb[0].mxu0 }
 0x174   : > { %v354_v9 = vpop.f32.mrb[1].mxu0  ;;  %v363_v13 = vadd.f32 %v592_v7, %v277_v6 }
 0x175   : > { %v593_v12 = vpop.f32.mrb[2].mxu0  ;;  %v355_v16 = vadd.f32 %v354_v9, %v275_v10 }
 0x176   : > { %v366_v14 = vadd.f32 %v593_v12, %v278_v8  ;;  %v357_v15 = vpop.f32.mrb[3].mxu0 }
 0x177   : > { %v358_v17 = vadd.f32 %v357_v15, %v276_v11 }
 0x178   : > { %v573_v18 = vpack.c.bf16 %v366_v14, %v363_v13 }
 0x179   : > { %v568_v19 = vpack.c.bf16 %v358_v17, %v355_v16 }
 0x17a   : > { %575 = vst [vmem:[%s258_s3 + $0x8] sm:$0xff] %v573_v18  }
 0x17b   : > { %569 = vst [vmem:[%s258_s3] sm:$0xff] %v568_v19  }
 0x17c   : > { %825 = shalt.err (!%p822_p12)
}
 0x17d   : > { %s826_s5 = scalar_lea.hbm %s1270_s28, 256  ;;  %s830_s23 = scalar_lea.hbm %s1384_s4, 1024 }
 0x17e   : > { %p827_p11 = scmp.ne.s32.totalorder %s1270_s28, %s826_s5  ;;  %p831_p4 = scmp.lt.u32.totalorder %s1270_s28, %s1384_s4 }
 0x17f   : > { %p832_p13 = scmp.lt.u32.totalorder %s830_s23, %s826_s5  ;;  %p834_p2 = scmp.lt.u32.totalorder %s826_s5, %s1270_s28 }
 0x180   : > { %p828_p9 = pnand %p827_p11, %p1385_p1 }
 0x181   : > { %p833_p3 = por %p832_p13, %p831_p4 }
 0x182   : > { %p829_p6 = pneg %p828_p9 }
 0x183   : > { %p835_p10 = por %p834_p2, %p833_p3 }
 0x185   : > { %p836_p5 = pnand %p835_p10, %p829_p6 }
 0x187   : > { %839 = shalt.err (!%p836_p5)
}
 0x188   : > { %s952_s11 = smov 64   ;;  %s953_s20 = smov 4  }
 0x189   : > { %602 = dma.vmem_to_hbm [thread:$0]  (%p1385_p1), %s1265_s24, 256, %s1270_s28, %s1274_s27, %s952_s11, %s952_s11, %s953_s20  }
 0x18a PF: > { %p622_p8 = scmp.ge.s32.totalorder %s942_s22, 2  ;;  %s420_s3 = sand.u32 1, %s914_s15  }
 0x18b   : > { %p1386_p7 = scmp.ne.s32.totalorder %s1367_s25, 0  ;;  %s421_s9 = scalar_lea.sflag [#allocation4], %s420_s3 }
 0x18d   : > { %p616_p0 = pnand %p622_p8, %p1386_p7 }
 0x18f   : > { %897 = dma.done.wait (!%p616_p0), %s421_s9, 256  }
 0x190   : > { %899 = vsyncadd (!%p616_p0), %s421_s9, 4294967040  ;;  %s20_s22 = sadd.s32 1, %s942_s22   ;;  %s1387_s19 = sld [smem:[#allocation13_spill]] }
 0x191   : > { %p17_p12 = scmp.ge.s32.totalorder %s20_s22, 6   ;;  %s1388_s17 = sld [smem:[#allocation18_spill]] }
 0x192   : > { %s1389_s18 = sld [smem:[#allocation15_spill]]  ;;  %s1390_s20 = sld [smem:[#allocation16_spill]] }
 0x193   : > { %s1391_s24 = sld [smem:[#allocation17_spill]]  ;;  %s1392_s12 = smov %s906_s13 }
 0x194   : > { %s1393_s13 = smov %s910_s14  ;;  %s1394_s14 = smov %s1165_s6 }
 0x195   : > { %s1395_s15 = smov %s918_s16  ;;  %19 = sbr.rel (!%p17_p12) target bundleno = 13 (0xd), region = 92 }
 0x196   : > { %s1396_s16 = smov %s1387_s19  ;;  %s1397_s19 = smov %s938_s21 }
 0x199   : > { %s1398_s21 = smov %s1391_s24 }
 0x19c   :  { %426 = vsyncpa [#allocation3], 1 }
 0x19d   :  { %428 = vsyncpa [#allocation3 + $0x1], 1 }
 0x19e   :  { %429 = vsyncpa [#allocation6], 1 }
 0x19f   :  { %430 = vsyncpa [#allocation4], 1 }
 0x1a0   :  { %432 = vsyncpa [#allocation4 + $0x1], 1 }

</bundles_post_ra>
